<compile_context>
chip_gen: v7x
topology: tpu7x:2x2x1
jax: 0.10.0
libtpu: 0.0.40
codegen_flags: <defaults>
</compile_context>

<pallas_src>
import functools

import jax
import jax.numpy as jnp
from jax import lax
from jax.experimental import pallas as pl
from jax.experimental.pallas import tpu as pltpu


def _round_up(x, m):
    return (x + m - 1) // m * m


def _sample_noisy_labels(u, tgt, C, p):
    """Inverse-CDF draw from the label-smoothing distribution.

    With prob (1-p) keep tgt, else pick uniformly among the other C-1 classes.
    Shared verbatim by the kernel and the pure-JAX reference so they match exactly.
    """
    keep = u < jnp.float32(1.0 - p)
    v = (u - jnp.float32(1.0 - p)) * jnp.float32(1.0 / p)          # in [0, 1) when !keep
    j = jnp.clip((v * jnp.float32(C - 1)).astype(jnp.int32), 0, C - 2)
    other = jnp.where(j >= tgt, j + 1, j)                           # skip the target index
    return jnp.where(keep, tgt, other)


def _label_noise_loss_kernel(pred_ref, side_ref, out_ref, *, p, n_rows):
    tn, C = pred_ref.shape
    tile = pl.program_id(0)

    pred = pred_ref[...].astype(jnp.float32)                        # (tn, C)
    side = side_ref[...]                                            # (tn, 1 or 2) f32
    tgt = side[:, 0:1].astype(jnp.int32)                            # (tn, 1)

    # Mask rows past the true batch size (ragged last tile; no wrapper-side padding).
    row = lax.broadcasted_iota(jnp.int32, (tn, 1), 0)
    valid = (tile * tn + row) < n_rows                               # (tn, 1)

    # log-sum-exp pieces; the full logp array is never materialized.
    m = jnp.max(pred, axis=-1, keepdims=True)                        # (tn, 1)
    lse = jnp.log(jnp.sum(jnp.exp(pred - m), axis=-1, keepdims=True))

    if p > 0.0:
        u = side[:, 1:2]                                             # (tn, 1) uniforms
        label = _sample_noisy_labels(u, tgt, C, p)
    else:
        label = tgt

    # pred[i, label_i] via one-hot masked lane-sum (no gather, no logp array).
    col = lax.broadcasted_iota(jnp.int32, (tn, C), 1)
    p_lab = jnp.sum(jnp.where(col == label, pred, 0.0), axis=-1, keepdims=True)

    # Per-row NLL, masked, reduced to a single per-tile partial sum.
    nll = jnp.where(valid, m + lse - p_lab, 0.0)                     # (tn, 1)
    out_ref[...] = jnp.sum(nll, axis=0, keepdims=True).reshape(1, 1, 1)


def _choose_tile_n(N, C, itemsize):
    """Batch tile size: VMEM-aware, >=2 grid programs (v7x), multiple of 16 (bf16)."""
    if N <= 16:
        return int(N)  # single full-batch block; 'equal full dim' exempts sublane alignment
    # VMEM bytes per batch row with lane padding and x2 pipeline buffers:
    #   pred tile: round_up(C,128) lanes * itemsize; packed side tile: 128 lanes * 4 B.
    per_row = 2 * _round_up(C, 128) * itemsize + 2 * 128 * 4
    budget = 12 * 1024 * 1024                 # under the 16 MiB v5e scoped-VMEM default
    tn = max(16, min(1024, budget // per_row))
    # Cap so the grid has >= 2 programs: both v7x TensorCores get work via "parallel";
    # costs only one extra ~0.35us grid step on single-TC v5e/v6e.
    tn = min(tn, _round_up(pl.cdiv(N, 2), 16))
    tn = min(tn, _round_up(N, 16))
    return int(_round_up(max(tn, 16), 16))


@functools.partial(jax.jit, static_argnames=("p", "tile_n"))
def _label_noise_loss_jit(pred, target, key, *, p, tile_n):
    N, C = pred.shape
    num_tiles = pl.cdiv(N, tile_n)

    # Pack target (+ one uniform per row when p > 0) into a single side input; the
    # uniform column is not even generated on the p == 0 path (p is static here).
    tgt_f = target.astype(jnp.float32)[:, None]                      # (N, 1)
    if p > 0.0:
        u = jax.random.uniform(key, (N,), dtype=jnp.float32)[:, None]
        side = jnp.concatenate([tgt_f, u], axis=1)                   # (N, 2)
    else:
        side = tgt_f                                                 # (N, 1)
    k = side.shape[1]

    kernel = functools.partial(_label_noise_loss_kernel, p=float(p), n_rows=N)

    partials = pl.pallas_call(
        kernel,
        out_shape=jax.ShapeDtypeStruct((num_tiles, 1, 1), jnp.float32),
        grid=(num_tiles,),
        in_specs=[
            pl.BlockSpec((tile_n, C), lambda i: (i, 0)),   # pred tile (f32 or bf16)
            pl.BlockSpec((tile_n, k), lambda i: (i, 0)),   # packed target(+uniform)
        ],
        out_specs=pl.BlockSpec((1, 1, 1), lambda i: (i, 0, 0)),  # per-tile partial sum
        compiler_params=pltpu.CompilerParams(
            dimension_semantics=("parallel",)),
    )(pred, side)

    # Tiny num_tiles-element reduce + divide, fused into this jit program.
    return jnp.sum(partials) / jnp.float32(N)


def label_noise_loss(pred, target, key, *, p=0.1, tile_n=None):
    """pred: (N, C) float (f32 or bf16), target: (N,) int, key: jax PRNG key.

    Returns the scalar mean loss (f32), matching LabelNoiseLoss.forward's return value.
    """
    N, C = pred.shape
    if p > 0.0 and C < 2:
        raise ValueError("p > 0 requires at least 2 classes")
    if tile_n is None:
        tile_n = _choose_tile_n(N, C, jnp.dtype(pred.dtype).itemsize)
    return _label_noise_loss_jit(pred, target.astype(jnp.int32), key,
                                 p=float(p), tile_n=int(tile_n))


# ----------------------------- pure-JAX references ------------------------------------

def _nll_reference(pred, labels):
    logp = jax.nn.log_softmax(pred.astype(jnp.float32), axis=-1)
    return -jnp.mean(jnp.take_along_axis(logp, labels[:, None], axis=-1))


def _label_noise_reference(pred, target, key, p):
    # Same uniforms and the SAME sampling helper as the kernel -> exact match.
    N, C = pred.shape
    u = jax.random.uniform(key, (N,), dtype=jnp.float32)
    noisy = _sample_noisy_labels(u, target, C, p)
    return _nll_reference(pred, noisy)


if __name__ == "__main__":
    root = jax.random.PRNGKey(0)
    k_pred, k_tgt, k_noise = jax.random.split(root, 3)

    N, C = 40, 10  # CIFAR-10-like: small batch, 10 classes (exercises the ragged tile)
    pred = jax.random.normal(k_pred, (N, C), dtype=jnp.float32)
    target = jax.random.randint(k_tgt, (N,), 0, C, dtype=jnp.int32)

    # p > 0: in-kernel inverse-CDF sampling of the smoothed label distribution.
    loss = jax.block_until_ready(label_noise_loss(pred, target, k_noise, p=0.1))
    ref = _label_noise_reference(pred, target, k_noise, 0.1)
    assert jnp.isfinite(loss), "loss is not finite"
    assert jnp.allclose(loss, ref, atol=1e-5, rtol=1e-5), (loss, ref)

    # p == 0 must equal plain nll_loss(log_softmax(pred), target).
    loss0 = jax.block_until_ready(label_noise_loss(pred, target, k_noise, p=0.0))
    ref0 = _nll_reference(pred, target)
    assert jnp.allclose(loss0, ref0, atol=1e-5, rtol=1e-5), (loss0, ref0)

    # bf16 pred path (halves the dominant HBM read); kernel upcasts to f32 internally.
    pred_bf = pred.astype(jnp.bfloat16)
    loss_bf = jax.block_until_ready(label_noise_loss(pred_bf, target, k_noise, p=0.1))
    ref_bf = _label_noise_reference(pred_bf, target, k_noise, 0.1)
    assert jnp.allclose(loss_bf, ref_bf, atol=1e-3, rtol=1e-3), (loss_bf, ref_bf)

    print("KERNEL_OK")
</pallas_src>

<mosaic_0001>
module attributes {stable_mosaic.version = 11 : i64} {
  func.func @_label_noise_loss_kernel(%arg0: i32, %arg1: memref<32x10xf32, #tpu.memory_space<vmem>>, %arg2: memref<32x2xf32, #tpu.memory_space<vmem>>, %arg3: memref<1x1x1xf32, #tpu.memory_space<vmem>>) attributes {dimension_semantics = [#tpu.dimension_semantics<parallel>], iteration_bounds = array<i64: 2>, scalar_prefetch = 0 : i64, scratch_operands = 0 : i64, tpu.core_type = #tpu.core_type<tc>, window_params = [{transform_indices = @transform_0, window_bounds = array<i64: 32, 10>}, {transform_indices = @transform_1, window_bounds = array<i64: 32, 2>}, {transform_indices = @transform_2, window_bounds = array<i64: 1, 1, 1>}]} {
    %c0 = arith.constant 0 : index
    %c0_0 = arith.constant 0 : index
    %0 = vector.load %arg1[%c0, %c0_0] : memref<32x10xf32, #tpu.memory_space<vmem>>, vector<32x10xf32>
    %c0_1 = arith.constant 0 : index
    %c0_2 = arith.constant 0 : index
    %1 = vector.load %arg2[%c0_1, %c0_2] : memref<32x2xf32, #tpu.memory_space<vmem>>, vector<32x2xf32>
    %2 = vector.extract_strided_slice %1 {offsets = [0, 0], sizes = [32, 1], strides = [1, 1]} : vector<32x2xf32> to vector<32x1xf32>
    %3 = arith.fptosi %2 : vector<32x1xf32> to vector<32x1xi32>
    %4 = tpu.iota {dimensions = array<i32: 0>} : vector<32x1xi32>
    %c32_i32 = arith.constant 32 : i32
    %5 = arith.muli %arg0, %c32_i32 : i32
    %6 = vector.broadcast %5 : i32 to vector<32x1xi32>
    %7 = arith.addi %6, %4 : vector<32x1xi32>
    %c40_i32 = arith.constant 40 : i32
    %8 = vector.broadcast %c40_i32 : i32 to vector<32x1xi32>
    %9 = arith.cmpi slt, %7, %8 : vector<32x1xi32>
    %cst = arith.constant dense<0xFF800000> : vector<32xf32>
    %10 = vector.multi_reduction <maximumf>, %0, %cst [1] : vector<32x10xf32> to vector<32xf32>
    %11 = vector.shape_cast %10 : vector<32xf32> to vector<32x1xf32>
    %12 = vector.broadcast %11 : vector<32x1xf32> to vector<32x10xf32>
    %13 = arith.subf %0, %12 : vector<32x10xf32>
    %14 = math.exp %13 : vector<32x10xf32>
    %cst_3 = arith.constant dense<0.000000e+00> : vector<32xf32>
    %15 = vector.multi_reduction <add>, %14, %cst_3 [1] : vector<32x10xf32> to vector<32xf32>
    %16 = vector.shape_cast %15 : vector<32xf32> to vector<32x1xf32>
    %17 = math.log %16 : vector<32x1xf32>
    %18 = vector.extract_strided_slice %1 {offsets = [0, 1], sizes = [32, 1], strides = [1, 1]} : vector<32x2xf32> to vector<32x1xf32>
    %cst_4 = arith.constant 0.899999976 : f32
    %19 = vector.broadcast %cst_4 : f32 to vector<32x1xf32>
    %20 = arith.cmpf olt, %18, %19 : vector<32x1xf32>
    %cst_5 = arith.constant 0.899999976 : f32
    %21 = vector.broadcast %cst_5 : f32 to vector<32x1xf32>
    %22 = arith.subf %18, %21 : vector<32x1xf32>
    %cst_6 = arith.constant 1.000000e+01 : f32
    %23 = vector.broadcast %cst_6 : f32 to vector<32x1xf32>
    %24 = arith.mulf %22, %23 : vector<32x1xf32>
    %cst_7 = arith.constant 9.000000e+00 : f32
    %25 = vector.broadcast %cst_7 : f32 to vector<32x1xf32>
    %26 = arith.mulf %24, %25 : vector<32x1xf32>
    %27 = arith.fptosi %26 : vector<32x1xf32> to vector<32x1xi32>
    %c0_i32 = arith.constant 0 : i32
    %c8_i32 = arith.constant 8 : i32
    %28 = vector.broadcast %c0_i32 : i32 to vector<32x1xi32>
    %29 = arith.maxsi %28, %27 : vector<32x1xi32>
    %30 = vector.broadcast %c8_i32 : i32 to vector<32x1xi32>
    %31 = arith.minsi %30, %29 : vector<32x1xi32>
    %32 = arith.cmpi sge, %31, %3 : vector<32x1xi32>
    %c1_i32 = arith.constant 1 : i32
    %33 = vector.broadcast %c1_i32 : i32 to vector<32x1xi32>
    %34 = arith.addi %31, %33 : vector<32x1xi32>
    %35 = arith.select %32, %34, %31 : vector<32x1xi1>, vector<32x1xi32>
    %36 = arith.select %20, %3, %35 : vector<32x1xi1>, vector<32x1xi32>
    %37 = tpu.iota {dimensions = array<i32: 1>} : vector<32x10xi32>
    %38 = vector.broadcast %36 : vector<32x1xi32> to vector<32x10xi32>
    %39 = arith.cmpi eq, %37, %38 : vector<32x10xi32>
    %cst_8 = arith.constant 0.000000e+00 : f32
    %40 = vector.broadcast %cst_8 : f32 to vector<32x10xf32>
    %41 = arith.select %39, %0, %40 : vector<32x10xi1>, vector<32x10xf32>
    %cst_9 = arith.constant dense<0.000000e+00> : vector<32xf32>
    %42 = vector.multi_reduction <add>, %41, %cst_9 [1] : vector<32x10xf32> to vector<32xf32>
    %43 = vector.shape_cast %42 : vector<32xf32> to vector<32x1xf32>
    %44 = arith.addf %11, %17 : vector<32x1xf32>
    %45 = arith.subf %44, %43 : vector<32x1xf32>
    %cst_10 = arith.constant 0.000000e+00 : f32
    %46 = vector.broadcast %cst_10 : f32 to vector<32x1xf32>
    %47 = arith.select %9, %45, %46 : vector<32x1xi1>, vector<32x1xf32>
    %cst_11 = arith.constant dense<0.000000e+00> : vector<1xf32>
    %48 = vector.multi_reduction <add>, %47, %cst_11 [0] : vector<32x1xf32> to vector<1xf32>
    %49 = vector.shape_cast %48 : vector<1xf32> to vector<1x1xf32>
    %50 = vector.shape_cast %49 : vector<1x1xf32> to vector<1x1x1xf32>
    %c0_12 = arith.constant 0 : index
    %c0_13 = arith.constant 0 : index
    %c0_14 = arith.constant 0 : index
    %51 = vector.load %arg3[%c0_12, %c0_13, %c0_14] : memref<1x1x1xf32, #tpu.memory_space<vmem>>, vector<1x1x1xf32>
    tpu.vector_store %arg3[%c0_12, %c0_13, %c0_14], %50 {strides = array<i32>} : memref<1x1x1xf32, #tpu.memory_space<vmem>>, vector<1x1x1xf32>,
    return
  }
  func.func @transform_0(%arg0: i32) -> (i32, i32) {
    %c0_i32 = arith.constant 0 : i32
    %c0_i32_0 = arith.constant 0 : i32
    return %arg0, %c0_i32 : i32, i32
  }
  func.func @transform_1(%arg0: i32) -> (i32, i32) {
    %c0_i32 = arith.constant 0 : i32
    %c0_i32_0 = arith.constant 0 : i32
    return %arg0, %c0_i32 : i32, i32
  }
  func.func @transform_2(%arg0: i32) -> (i32, i32, i32) {
    %c0_i32 = arith.constant 0 : i32
    %c0_i32_0 = arith.constant 0 : i32
    %c0_i32_1 = arith.constant 0 : i32
    return %arg0, %c0_i32, %c0_i32_0 : i32, i32, i32
  }
}

</mosaic_0001>

<bundles_post_ra>
// kernel: _label_noise_loss_jit.1
= control target key start
LH: loop header
LB: loop body
LE: loop exit
PB: predicated region body
PF: predicated region fallthrough
CT: control target
= control target key end

     0   :  { %s537_s9 = smov 0   ;;  %s631_s0 = inlined_call_operand.vmem [shape: f32[40,10], index: 0, kind: input, shape index: {}]   ;;  %s632_s1 = inlined_call_operand.vmem [shape: f32[40,2], index: 1, kind: input, shape index: {}]   ;;  %s633_s2 = inlined_call_operand.vmem [shape: f32[2,1,1], index: 2, kind: output, shape index: {}]  }
   0x1 LB: > { %s543_s10 = sadd.s32 4294967295, %s518_s9   ;;  %p456_p0 = scmp.ge.s32.totalorder %s518_s9, 1  ;;  %s518_s9 = sphi %s537_s9, %s12_s9  }
   0x2   : > { %p140_p1 = scmp.lt.s32.totalorder %s518_s9, 3 }
   0x4   : > { %p141_p2 = pnand %p456_p0, %p140_p1 }
   0x5   : > { %s457_s11 = sshll.u32 (!%p141_p2), %s543_s10, 2  ;;  %v520_v0 = vmov (!%p141_p2), 1   ;;  %s521_s16 = smov (!%p141_p2), 1   ;;  %vm231_vm0 = vcmask (!%p141_p2), 80896  }
   0x6   : > { %144 = sbr.rel (%p141_p2) target bundleno = 440 (0x1b8), region = 28  ;;  %p178_p3 = scmp.lt.s32.totalorder (!%p141_p2), %s457_s11, 4  ;;  %494 = vset.pattern.permute.xlu1 (!%p141_p2), %v520_v0  ;;  %495 = vset.pattern.permute.xlu0 (!%p141_p2), %v520_v0 }
   0x7   : > { %s461_s20 = sshll.u32 (!%p141_p2), %s543_s10, 5  ;;  %p201_p4 = scmp.lt.s32.totalorder (!%p141_p2), %s543_s10, 1 }
   0xd   : > { %s635_s11 = smov (!%p178_p3, %s457_s11), 4  ;;  %s637_s10 = smov (!%p201_p4, %s543_s10), 1 }
   0xe   : > { %s458_s12 = sshll.u32 %s635_s11, 3  ;;  %s203_s23 = scalar_lea.vmem %s633_s2, %s637_s10 }
   0xf   : > { %s195_s15 = scalar_lea.vmem %s632_s1, %s458_s12  ;;  %s181_s19 = scalar_lea.vmem %s631_s0, %s458_s12 }
  0x10   : > { %v551_v1 = vld [vmem:[%s195_s15 + $0x10] sm:$0xff]  ;;  %v553_v2 = vld [vmem:[%s195_s15] sm:$0xff]  ;;  %v555_v3 = vld [vmem:[%s195_s15 + $0x18] sm:$0xff] }
  0x11   : > { %v472_v4 = vtrunc.f32 %v551_v1  ;;  %v468_v5 = vtrunc.f32 %v553_v2  ;;  %v559_v6 = vld [vmem:[%s195_s15 + $0x8] sm:$0xff]  ;;  %v474_v7 = vtrunc.f32 %v555_v3  ;;  %v566_v13 = vld [vmem:[%s181_s19] sm:$0xff]  ;;  %v570_v15 = vld [vmem:[%s181_s19 + $0x10] sm:$0xff]  ;;  %v464_v21 = vadd.f32 -0.9, %v551_v1 }
  0x12   : > { %v470_v8 = vtrunc.f32 %v559_v6  ;;  %v232_v14 = vsel %vm231_vm0, %v566_v13, -inf  ;;  %v572_v16 = vld [vmem:[%s181_s19 + $0x8] sm:$0xff]  ;;  %v238_v17 = vsel %vm231_vm0, %v570_v15, -inf  ;;  %v578_v19 = vld [vmem:[%s181_s19 + $0x18] sm:$0xff]  ;;  %v462_v22 = vadd.f32 -0.9, %v553_v2 }
  0x13   : > { %v473_v9 = vcvt.f32.s32 %v472_v4  ;;  %v469_v10 = vcvt.f32.s32 %v468_v5  ;;  %v475_v11 = vcvt.f32.s32 %v474_v7  ;;  %v235_v18 = vsel %vm231_vm0, %v572_v16, -inf }
  0x14   : > { %v471_v12 = vcvt.f32.s32 %v470_v8  ;;  %v241_v20 = vsel %vm231_vm0, %v578_v19, -inf  ;;  %v286_v23 = vmul.f32 10.0, %v464_v21  ;;  %v284_v24 = vmul.f32 10.0, %v462_v22 }
  0x15   : > { %316 = vrot.lane.b32.xlu1 %v473_v9, %s521_s16  ;;  %312 = vrot.lane.b32.xlu0 %v469_v10, %s521_s16  ;;  %v463_v25 = vadd.f32 -0.9, %v559_v6  ;;  %v465_v26 = vadd.f32 -0.9, %v555_v3  ;;  %vm276_vm9 = vcmp.lt.f32.partialorder %v553_v2, 0.9 }
  0x16   : > { %v290_v27 = vmul.f32 9.0, %v286_v23  ;;  %v288_v28 = vmul.f32 9.0, %v284_v24  ;;  %vm278_vm12 = vcmp.lt.f32.partialorder %v551_v1, 0.9  ;;  %vm277_vm13 = vcmp.lt.f32.partialorder %v559_v6, 0.9 }
  0x17   : > { %v285_v29 = vmul.f32 10.0, %v463_v25  ;;  %v287_v30 = vmul.f32 10.0, %v465_v26  ;;  %v216_v25 = vlaneseq }
  0x18   : > { %v476_v31 = vtrunc.f32 %v288_v28  ;;  %v480_v32 = vtrunc.f32 %v290_v27 }
  0x19   : > { %318 = vrot.lane.b32.xlu1 %v475_v11, %s521_s16  ;;  %314 = vrot.lane.b32.xlu0 %v471_v12, %s521_s16  ;;  %v289_v33 = vmul.f32 9.0, %v285_v29  ;;  %v291_v34 = vmul.f32 9.0, %v287_v30  ;;  %v337_v26 = vand.u32 127, %v216_v25 }
  0x1a   : > { %v477_v35 = vcvt.f32.s32 %v476_v31  ;;  %v481_v36 = vcvt.f32.s32 %v480_v32 }
  0x1b   : > { %v478_v37 = vtrunc.f32 %v289_v33  ;;  %v482_v38 = vtrunc.f32 %v291_v34 }
  0x1c   : > { %vm296_vm1 = vcmp.gt.s32.totalorder %v477_v35, 0  ;;  %vm300_vm2 = vcmp.gt.s32.totalorder %v481_v36, 0 }
  0x1d   : > { %v479_v39 = vcvt.f32.s32 %v478_v37  ;;  %v483_v40 = vcvt.f32.s32 %v482_v38  ;;  %v297_v41 = vsel %vm296_vm1, %v477_v35, 0  ;;  %v301_v42 = vsel %vm300_vm2, %v481_v36, 0 }
  0x1e   : > { %vm304_vm5 = vcmp.lt.s32.totalorder %v297_v41, 8  ;;  %vm308_vm6 = vcmp.lt.s32.totalorder %v301_v42, 8  ;;  %vm279_vm1 = vcmp.lt.f32.partialorder %v555_v3, 0.9 }
  0x1f   : > { %vm298_vm3 = vcmp.gt.s32.totalorder %v479_v39, 0  ;;  %vm302_vm4 = vcmp.gt.s32.totalorder %v483_v40, 0  ;;  %v305_v45 = vsel %vm304_vm5, %v297_v41, 8  ;;  %v309_v46 = vsel %vm308_vm6, %v301_v42, 8 }
  0x20   : > { %v299_v43 = vsel %vm298_vm3, %v479_v39, 0  ;;  %v303_v44 = vsel %vm302_vm4, %v483_v40, 0  ;;  %v324_v47 = vadd.s32 1, %v305_v45  ;;  %v326_v48 = vadd.s32 1, %v309_v46 }
  0x21   : > { %vm306_vm7 = vcmp.lt.s32.totalorder %v299_v43, 8  ;;  %vm310_vm8 = vcmp.lt.s32.totalorder %v303_v44, 8  ;;  %v217_v41 = vshrl.u32 %v216_v25, 7 }
  0x22   : > { %v307_v49 = vsel %vm306_vm7, %v299_v43, 8  ;;  %v311_v50 = vsel %vm310_vm8, %v303_v44, 8 }
  0x23   : > { %v325_v53 = vadd.s32 1, %v307_v49  ;;  %v327_v55 = vadd.s32 1, %v311_v50 }
  0x38   : > { %233 = vmax.xlane.f32.xlu0 %v232_v14 }
  0x3c   : > { %239 = vmax.xlane.f32.xlu0 %v238_v17 }
  0x3d   : > { %236 = vmax.xlane.f32.xlu1 %v235_v18 }
  0x40   : > { %242 = vmax.xlane.f32.xlu0 %v241_v20 }
  0x87   : > { %v313_v51 = vpop.permute.xlu0 %312  ;;  %v317_v52 = vpop.permute.xlu1 %316 }
  0x88   : > { %vm320_vm10 = vcmp.ge.s32.totalorder %v305_v45, %v313_v51  ;;  %vm322_vm11 = vcmp.ge.s32.totalorder %v309_v46, %v317_v52 }
  0x89   : > { %v328_v54 = vsel %vm320_vm10, %v324_v47, %v305_v45  ;;  %v330_v56 = vsel %vm322_vm11, %v326_v48, %v309_v46  ;;  %v222_v46 = vstv %s461_s20 }
  0x8a   : > { %v332_v57 = vsel %vm276_vm9, %v313_v51, %v328_v54  ;;  %v334_v60 = vsel %vm278_vm12, %v317_v52, %v330_v56  ;;  %v223_v51 = vadd.s32 %v222_v46, %v217_v41  ;;  %v220_v52 = vadd.s32 24, %v217_v41 }
  0x8b   : > { %v315_v58 = vpop.permute.xlu0 %314  ;;  %339 = vperm.xlu1 %494, %v332_v57   ;;  %v319_v59 = vpop.permute.xlu1 %318  ;;  %vm391_vm9 = vcmask 0  }
  0x8c   : > { %vm321_vm14 = vcmp.ge.s32.totalorder %v307_v49, %v315_v58  ;;  %vm323_vm15 = vcmp.ge.s32.totalorder %v311_v50, %v319_v59  ;;  %vm227_vm6 = vcmp.lt.s32.totalorder %v223_v51, 40 }
  0x8d   : > { %v329_v61 = vsel %vm321_vm14, %v325_v53, %v307_v49  ;;  %v331_v62 = vsel %vm323_vm15, %v327_v55, %v311_v50  ;;  %v219_v50 = vadd.s32 16, %v217_v41 }
  0x8e   : > { %v333_v63 = vsel %vm277_vm13, %v315_v58, %v329_v61  ;;  %v335_v0 = vsel %vm279_vm1, %v319_v59, %v331_v62  ;;  %v226_v61 = vadd.s32 %v222_v46, %v220_v52 }
  0x8f   : > { %345 = vperm.xlu1 %494, %v334_v60   ;;  %342 = vperm.xlu0 %495, %v333_v63   ;;  %v225_v58 = vadd.s32 %v222_v46, %v219_v50 }
  0x90   : > { %vm230_vm8 = vcmp.lt.s32.totalorder %v226_v61, 40 }
  0x91   : > { %vm229_vm7 = vcmp.lt.s32.totalorder %v225_v58, 40 }
  0x93   : > { %348 = vperm.xlu1 %494, %v335_v0  }
  0xc5   : > { %v590_v1 = vpop.xlane.xlu0 %233 }
  0xc6   : > { %v244_v2 = vsub.f32 %v566_v13, %v590_v1 }
  0xc8   : > { %v248_v4 = vmul.f32 1.442695, %v244_v2 }
  0xc9   : > { %v594_v5 = vpop.xlane.xlu0 %239 }
  0xca   : > { %496 = vpow2.f32 %v248_v4  ;;  %v246_v6 = vsub.f32 %v570_v15, %v594_v5  ;;  %v598_v7 = vpop.xlane.xlu1 %236 }
  0xcb   : > { %v245_v3 = vsub.f32 %v572_v16, %v598_v7 }
  0xcc   : > { %v252_v8 = vmul.f32 1.442695, %v246_v6 }
  0xcd   : > { %v250_v9 = vmul.f32 1.442695, %v245_v3  ;;  %v602_v10 = vpop.xlane.xlu0 %242 }
  0xce   : > { %498 = vpow2.f32 %v252_v8  ;;  %v247_v11 = vsub.f32 %v578_v19, %v602_v10 }
  0xcf   : > { %500 = vpow2.f32 %v250_v9 }
  0xd0   : > { %v254_v12 = vmul.f32 1.442695, %v247_v11 }
  0xd2   : > { %502 = vpow2.f32 %v254_v12 }
  0xd4   : > { %v497_v14 = vpop.eup %496 }
  0xd5   : > { %v256_v17 = vsel %vm231_vm0, %v497_v14, 0.0 }
  0xd6   : > { %257 = vadd.xlane.f32.xlu1 %v256_v17 }
  0xd8   : > { %v499_v18 = vpop.eup %498 }
  0xd9   : > { %v501_v20 = vpop.eup %500  ;;  %v262_v21 = vsel %vm231_vm0, %v499_v18, 0.0 }
  0xda   : > { %263 = vadd.xlane.f32.xlu1 %v262_v21  ;;  %v259_v22 = vsel %vm231_vm0, %v501_v20, 0.0 }
  0xdb   : > { %260 = vadd.xlane.f32.xlu0 %v259_v22 }
  0xdc   : > { %v503_v23 = vpop.eup %502 }
  0xdd   : > { %v265_v24 = vsel %vm231_vm0, %v503_v23, 0.0 }
  0xde   : > { %266 = vadd.xlane.f32.xlu1 %v265_v24 }
 0x10a   : > { %v340_v27 = vpop.permute.xlu1 %339 }
 0x10b   : > { %vm350_vm2 = vcmp.eq.s32.totalorder %v337_v26, %v340_v27 }
 0x10c   : > { %v354_v28 = vsel %vm350_vm2, %v566_v13, 0.0 }
 0x10d   : > { %v358_v29 = vsel %vm231_vm0, %v354_v28, 0.0 }
 0x10e   : > { %v346_v30 = vpop.permute.xlu1 %345  ;;  %359 = vadd.xlane.f32.xlu1 %v358_v29  ;;  %v343_v31 = vpop.permute.xlu0 %342 }
 0x10f   : > { %vm352_vm3 = vcmp.eq.s32.totalorder %v337_v26, %v346_v30  ;;  %vm351_vm4 = vcmp.eq.s32.totalorder %v337_v26, %v343_v31 }
 0x110   : > { %v355_v32 = vsel %vm351_vm4, %v572_v16, 0.0  ;;  %v356_v35 = vsel %vm352_vm3, %v570_v15, 0.0 }
 0x111   : > { %v361_v33 = vsel %vm231_vm0, %v355_v32, 0.0  ;;  %v364_v37 = vsel %vm231_vm0, %v356_v35, 0.0 }
 0x112   : > { %v349_v34 = vpop.permute.xlu1 %348  ;;  %362 = vadd.xlane.f32.xlu1 %v361_v33 }
 0x113   : > { %vm353_vm5 = vcmp.eq.s32.totalorder %v337_v26, %v349_v34 }
 0x114   : > { %v357_v36 = vsel %vm353_vm5, %v578_v19, 0.0  ;;  %v218_v19 = vadd.s32 8, %v217_v41 }
 0x115   : > { %v367_v13 = vsel %vm231_vm0, %v357_v36, 0.0 }
 0x116   : > { %368 = vadd.xlane.f32.xlu0 %v367_v13  ;;  %365 = vadd.xlane.f32.xlu1 %v364_v37  ;;  %v224_v49 = vadd.s32 %v222_v46, %v218_v19 }
 0x118   : > { %vm228_vm0 = vcmp.lt.s32.totalorder %v224_v49, 40 }
 0x163   : > { %v258_v38 = vpop.xlane.xlu1 %257 }
 0x164   : > { %504 = vlog2.f32 %v258_v38 }
 0x167   : > { %v264_v39 = vpop.xlane.xlu1 %263 }
 0x168   : > { %v261_v40 = vpop.xlane.xlu0 %260 }
 0x169   : > { %506 = vlog2.f32 %v261_v40 }
 0x16a   : > { %508 = vlog2.f32 %v264_v39 }
 0x16b   : > { %v267_v16 = vpop.xlane.xlu1 %266 }
 0x16c   : > { %510 = vlog2.f32 %v267_v16 }
 0x16e   : > { %v505_v15 = vpop.eup %504 }
 0x16f   : > { %v269_v44 = vmul.f32 0.6931472, %v505_v15 }
 0x171   : > { %v370_v55 = vadd.f32 %v269_v44, %v590_v1 }
 0x173   : > { %v507_v42 = vpop.eup %506 }
 0x174   : > { %v509_v43 = vpop.eup %508  ;;  %v271_v45 = vmul.f32 0.6931472, %v507_v42 }
 0x175   : > { %v273_v53 = vmul.f32 0.6931472, %v509_v43 }
 0x176   : > { %v511_v47 = vpop.eup %510  ;;  %v371_v56 = vadd.f32 %v271_v45, %v598_v7 }
 0x177   : > { %v275_v54 = vmul.f32 0.6931472, %v511_v47  ;;  %v372_v63 = vadd.f32 %v273_v53, %v594_v5 }
 0x179   : > { %v373_v0 = vadd.f32 %v275_v54, %v602_v10 }
 0x19b   : > { %v360_v48 = vpop.xlane.xlu1 %359 }
 0x19c   : > { %v374_v59 = vsub.f32 %v370_v55, %v360_v48 }
 0x19e   : > { %v378_v1 = vsel %vm227_vm6, %v374_v59, 0.0 }
 0x19f   : > { %v363_v57 = vpop.xlane.xlu1 %362 }
 0x1a0   : > { %v375_v60 = vsub.f32 %v371_v56, %v363_v57 }
 0x1a2   : > { %v379_v62 = vsel %vm228_vm0, %v375_v60, 0.0 }
 0x1a3   : > { %v366_v2 = vpop.xlane.xlu1 %365  ;;  %v369_v4 = vpop.xlane.xlu0 %368  ;;  %v382_v3 = vadd.f32 %v379_v62, %v378_v1 }
 0x1a4   : > { %v376_v6 = vsub.f32 %v372_v63, %v366_v2  ;;  %v377_v7 = vsub.f32 %v373_v0, %v369_v4 }
 0x1a6   : > { %v380_v8 = vsel %vm229_vm7, %v376_v6, 0.0  ;;  %v381_v11 = vsel %vm230_vm8, %v377_v7, 0.0 }
 0x1a7   : > { %v383_v9 = vadd.f32 %v382_v3, %v380_v8 }
 0x1a9   : > { %v384_v12 = vadd.f32 %v383_v9, %v381_v11 }
 0x1ab   : > { %v385_v14 = vrot.slane %v384_v12, 4 }
 0x1ad   : > { %v386_v17 = vadd.f32 %v385_v14, %v384_v12 }
 0x1af   : > { %v387_v18 = vrot.slane %v386_v17, 2 }
 0x1b1   : > { %v388_v5 = vadd.f32 %v387_v18, %v386_v17 }
 0x1b3   : > { %v389_v10 = vrot.slane %v388_v5, 1 }
 0x1b5   : > { %v390_v20 = vadd.f32 %v389_v10, %v388_v5 }
 0x1b7   : > { %392 = vst.msk [vmem:[%s203_s23] sm:$0x1] %vm391_vm9, %v390_v20 }
 0x1b8 PF: > { %s12_s9 = sadd.s32 1, %s518_s9  }
 0x1b9   : > { %p9_p5 = scmp.ge.s32.totalorder %s12_s9, 4  }
 0x1bb   :  { %11 = sbr.rel (!%p9_p5) target bundleno = 1 (0x1), region = 61 }

</bundles_post_ra>
